<compile_context>
chip_gen: v7x
topology: tpu7x:2x2x1
jax: 0.10.0
libtpu: 0.0.40
codegen_flags: <defaults>
</compile_context>

<pallas_src>
import functools

import numpy as np
import jax
import jax.numpy as jnp
from jax import lax
from jax.experimental import pallas as pl
from jax.experimental.pallas import tpu as pltpu

LANE = 128           # lanes per vreg (fast box axis)
SUBLANE = 8          # f32 sublanes per vreg
CHUNK_ROWS = 32      # rows per compute chunk: ~14 live values x 4 vregs < 64-vreg file
TILE_ROWS_MAX = 512  # rows per grid step: 11*512*128*4B ~ 2.9 MiB/step, x2 buffers < 16 MiB


# ----------------------------- Pallas kernel body ----------------------------
def _gwd_loss_chunk(packed_ref, r0, rows, *, eps, alpha, tau, norm, has_weight):
    """Weighted GWD loss for one (rows, LANE) chunk starting at sublane row r0."""
    def comp(k):
        return packed_ref[k, pl.ds(r0, rows), :]

    # center distance
    dx = comp(0) - comp(5)
    dy = comp(1) - comp(6)
    xy_dist = dx * dx + dy * dy

    pw = jnp.maximum(comp(2), eps)
    ph = jnp.maximum(comp(3), eps)
    tw = jnp.maximum(comp(7), eps)
    th = jnp.maximum(comp(8), eps)
    # exact identity: sqrt(det(Sp)*det(St)) = pw*ph*tw*th / 16   (all > 0 after clamp)
    t_det_sqrt = 0.0625 * (pw * ph) * (tw * th)

    pa, pb = 0.25 * pw * pw, 0.25 * ph * ph      # eigenvalues of pred sigma
    ta, tb = 0.25 * tw * tw, 0.25 * th * th      # eigenvalues of target sigma

    pth, tth = comp(4), comp(9)
    pc, ps = jnp.cos(pth), jnp.sin(pth)
    tc, ts = jnp.cos(tth), jnp.sin(tth)
    pcc, pss, pcs = pc * pc, ps * ps, pc * ps
    tcc, tss, tcs = tc * tc, ts * ts, tc * ts

    p11 = pa * pcc + pb * pss
    p12 = (pa - pb) * pcs
    p22 = pa * pss + pb * pcc
    t11 = ta * tcc + tb * tss
    t12 = (ta - tb) * tcs
    t22 = ta * tss + tb * tcc

    t_tr = p11 * t11 + 2.0 * (p12 * t12) + p22 * t22         # tr(Sp @ St), symmetric 2x2
    whr = (pa + pb) + (ta + tb) \
        - 2.0 * jnp.sqrt(jnp.maximum(t_tr + 2.0 * t_det_sqrt, 0.0))

    if alpha == 1.0:                                          # static: skip the multiply
        arg = xy_dist + whr
    else:
        arg = xy_dist + (alpha * alpha) * whr
    dist = jnp.sqrt(jnp.maximum(arg, 0.0))

    if norm:
        # dist / (2*max(det^(1/4), eps)) == dist * 0.5 * min(det^(-1/4), 1/eps); all EUP.
        inv_q = jnp.minimum(jnp.sqrt(lax.rsqrt(t_det_sqrt)), 1.0 / eps)
        dist = dist * (0.5 * inv_q)

    # exact outer reciprocal (loss value / gradient accuracy matters here)
    loss = 1.0 - 1.0 / (tau + jnp.log1p(dist))

    if has_weight:
        loss = loss * comp(10)
    return loss


def _gwd_sum_kernel(packed_ref, out_ref, *, eps, alpha, tau, norm, has_weight,
                    chunk_rows, tile_rows, n_valid, needs_mask):
    """Accumulate per-chunk partial sums into a resident (8, LANE) output block."""
    @pl.when(pl.program_id(1) == 0)
    def _():
        out_ref[...] = jnp.zeros_like(out_ref)

    n_chunks = tile_rows // chunk_rows

    if needs_mask:
        # weightless path: zero out padded boxes (their loss is not exactly 0 in general).
        flat = (lax.broadcasted_iota(jnp.int32, (chunk_rows, LANE), 0) * LANE
                + lax.broadcasted_iota(jnp.int32, (chunk_rows, LANE), 1))
        tile_idx = pl.program_id(0) * pl.num_programs(1) + pl.program_id(1)
        tile_base = tile_idx * (tile_rows * LANE)

    def body(c, acc):
        r0 = pl.multiple_of(c * chunk_rows, chunk_rows)
        loss = _gwd_loss_chunk(packed_ref, r0, chunk_rows, eps=eps, alpha=alpha,
                               tau=tau, norm=norm, has_weight=has_weight)
        if needs_mask:
            idx = tile_base + r0 * LANE + flat
            loss = jnp.where(idx < n_valid, loss, 0.0)
        # tree-fold the chunk down to one (8, LANE) vreg (pure VPU adds)
        return acc + loss.reshape(-1, SUBLANE, LANE).sum(axis=0)

    acc = lax.fori_loop(0, n_chunks, body, jnp.zeros((SUBLANE, LANE), jnp.float32))
    out_ref[...] += acc


def _gwd_none_kernel(packed_ref, out_ref, *, eps, alpha, tau, norm, has_weight, chunk_rows):
    """Per-box loss, written chunk-by-chunk (bounds live ranges at large tiles)."""
    tile_rows = out_ref.shape[0]
    n_chunks = tile_rows // chunk_rows

    @pl.loop(0, n_chunks)
    def _(c):
        r0 = pl.multiple_of(c * chunk_rows, chunk_rows)
        out_ref[pl.ds(r0, chunk_rows), :] = _gwd_loss_chunk(
            packed_ref, r0, chunk_rows, eps=eps, alpha=alpha, tau=tau,
            norm=norm, has_weight=has_weight)


# ----------------------------- Host-side glue ---------------------------------
def _num_tensorcores_per_chip():
    """2 on chips whose 'parallel' grid axis shards across TensorCores, else 1."""
    try:
        kind = jax.devices()[0].device_kind.lower()
    except Exception:
        return 1
    if ("v7" in kind) or ("7x" in kind) or ("v4" in kind):
        return 2
    return 1


def _tile_geometry(n, n_cores):
    n_rows = -(-n // LANE)
    chunk = CHUNK_ROWS if n_rows >= CHUNK_ROWS else SUBLANE
    n_rows = -(-n_rows // chunk) * chunk                  # rows padded to chunk multiple
    # keep >= 2 grid steps per TensorCore so the input DMA double-buffers, while making
    # each step's block as large as possible (amortizes the ~0.35us per-step overhead).
    min_tiles = 2 * n_cores
    tile_rows = max(chunk, min(TILE_ROWS_MAX, (n_rows // min_tiles) // chunk * chunk))
    total_tiles = -(-n_rows // tile_rows)
    return chunk, tile_rows, total_tiles


def _pack_inputs(pred, target, weight, n_rows_pad):
    """(N,5),(N,5)[,(N,)] -> (10|11, n_rows_pad, LANE) component-major, zero padded."""
    # TODO(synk): if the upstream head emitted component-major (5,N) tensors this relayout
    # pass over HBM (transpose/concat/pad, ~same bytes as the kernel reads) would disappear;
    # with the torch-style (N,5) interface it is unavoidable and runs as one XLA fusion.
    n = pred.shape[0]
    parts = [pred.astype(jnp.float32).T, target.astype(jnp.float32).T]
    if weight is not None:
        parts.append(weight.astype(jnp.float32)[None, :])
    comp = jnp.concatenate(parts, axis=0)                 # (10 or 11, N)
    comp = jnp.pad(comp, ((0, 0), (0, n_rows_pad * LANE - n)))
    return comp.reshape(comp.shape[0], n_rows_pad, LANE)


@functools.partial(jax.jit, static_argnames=("eps", "alpha", "tau", "norm"))
def gwd_loss_sum(pred, target, weight=None, *, eps=1e-6, alpha=1.0, tau=1.0, norm=True):
    """Weighted sum of GWD losses over all boxes; reduction accumulated in-kernel."""
    n = pred.shape[0]
    has_weight = weight is not None
    n_cores = _num_tensorcores_per_chip()
    chunk, tile_rows, total_tiles = _tile_geometry(n, n_cores)

    n_outer = n_cores if (n_cores > 1 and total_tiles >= n_cores) else 1
    n_inner = -(-total_tiles // n_outer)
    n_rows_pad = n_outer * n_inner * tile_rows
    packed = _pack_inputs(pred, target, weight, n_rows_pad)
    ncomp = packed.shape[0]
    needs_mask = (not has_weight) and (n_rows_pad * LANE != n)

    kernel = functools.partial(
        _gwd_sum_kernel, eps=eps, alpha=alpha, tau=tau, norm=norm,
        has_weight=has_weight, chunk_rows=chunk, tile_rows=tile_rows,
        n_valid=n, needs_mask=needs_mask)

    partial_sums = pl.pallas_call(
        kernel,
        out_shape=jax.ShapeDtypeStruct((n_outer * SUBLANE, LANE), jnp.float32),
        grid_spec=pltpu.PrefetchScalarGridSpec(
            num_scalar_prefetch=0,
            grid=(n_outer, n_inner),
            in_specs=[pl.BlockSpec((ncomp, tile_rows, LANE),
                                   lambda o, i: (0, o * n_inner + i, 0))],
            out_specs=pl.BlockSpec((SUBLANE, LANE), lambda o, i: (o, 0)),
        ),
        compiler_params=pltpu.CompilerParams(
            dimension_semantics=("parallel", "arbitrary")),
    )(packed)
    return partial_sums.sum()


@functools.partial(jax.jit, static_argnames=("eps", "alpha", "tau", "norm"))
def gwd_loss_none(pred, target, weight=None, *, eps=1e-6, alpha=1.0, tau=1.0, norm=True):
    """Per-box weighted GWD loss, shape (N,)."""
    n = pred.shape[0]
    has_weight = weight is not None
    n_cores = _num_tensorcores_per_chip()
    chunk, tile_rows, total_tiles = _tile_geometry(n, n_cores)
    n_rows_pad = total_tiles * tile_rows
    packed = _pack_inputs(pred, target, weight, n_rows_pad)
    ncomp = packed.shape[0]

    kernel = functools.partial(_gwd_none_kernel, eps=eps, alpha=alpha, tau=tau,
                               norm=norm, has_weight=has_weight, chunk_rows=chunk)
    out = pl.pallas_call(
        kernel,
        out_shape=jax.ShapeDtypeStruct((n_rows_pad, LANE), jnp.float32),
        grid_spec=pltpu.PrefetchScalarGridSpec(
            num_scalar_prefetch=0,
            grid=(total_tiles,),
            in_specs=[pl.BlockSpec((ncomp, tile_rows, LANE), lambda i: (0, i, 0))],
            out_specs=pl.BlockSpec((tile_rows, LANE), lambda i: (i, 0)),
        ),
        compiler_params=pltpu.CompilerParams(dimension_semantics=("parallel",)),
    )(packed)
    return out.reshape(-1)[:n]


# ------------------------------ Module wrapper -------------------------------
class GWDLoss:
    def __init__(self, tau=1.0, alpha=1.0, eps=1e-6, reduction='mean', loss_weight=1.0):
        self.tau = tau
        self.alpha = alpha
        self.eps = eps
        self.reduction = reduction
        self.loss_weight = loss_weight

    def __call__(self, pred, target, weight=None, avg_factor=None, reduction_override=None):
        assert pred.ndim == 2 and target.ndim == 2
        assert reduction_override in (None, 'none', 'mean', 'sum')
        reduction = reduction_override if reduction_override else self.reduction

        # NOTE: the torch module's all-zero-weight early return produces the same forward
        # value (0.0) as the regular weighted path, so the `torch.any(weight > 0)` check is
        # dropped here to avoid a device->host sync on every call (forward semantics kept).
        if weight is not None and weight.ndim > 1:
            assert weight.shape == pred.shape
            weight = weight.mean(-1)
        w = None if weight is None else weight.astype(jnp.float32)

        n = pred.shape[0]
        if reduction == 'none':
            assert avg_factor is None
            loss = gwd_loss_none(pred, target, w, eps=self.eps, alpha=self.alpha,
                                 tau=self.tau, norm=True)
        else:
            total = gwd_loss_sum(pred, target, w, eps=self.eps, alpha=self.alpha,
                                 tau=self.tau, norm=True)
            if reduction == 'mean':
                denom = float(n) if avg_factor is None else float(avg_factor)
                loss = total / denom
            else:  # 'sum'
                loss = total
        return self.loss_weight * loss


# ------------------------------ Pure-JAX reference ---------------------------
def _ref_get_sigma(inp, eps):
    wh = jnp.maximum(inp[..., 2:4], eps)
    theta = inp[..., 4:5]
    c, s = jnp.cos(theta), jnp.sin(theta)
    R = jnp.concatenate([c, -s, s, c], -1).reshape(-1, 2, 2)
    S = 0.5 * jax.vmap(jnp.diag)(wh)
    return (R @ (S * S) @ jnp.swapaxes(R, 1, 2)).reshape(-1, 2, 2)


def _ref_compute_gwd(pred, target, eps=1e-6, alpha=1.0, tau=1.0, norm=True):
    pred_xy, target_xy = pred[..., :2], target[..., :2]
    ps = _ref_get_sigma(pred, eps)
    ts = _ref_get_sigma(target, eps)
    xy_dist = jnp.sum((pred_xy - target_xy) ** 2, -1)
    whr = jnp.trace(ps, axis1=-2, axis2=-1) + jnp.trace(ts, axis1=-2, axis2=-1)
    t_tr = jnp.trace(ps @ ts, axis1=-2, axis2=-1)
    t_det_sqrt = jnp.sqrt(jnp.maximum(jnp.linalg.det(ps) * jnp.linalg.det(ts), 0.0))
    whr = whr - 2.0 * jnp.sqrt(jnp.maximum(t_tr + 2.0 * t_det_sqrt, 0.0))
    dist = jnp.sqrt(jnp.maximum(xy_dist + alpha * alpha * whr, 0.0))
    if norm:
        dist = dist / (2.0 * jnp.maximum(jnp.sqrt(jnp.sqrt(t_det_sqrt)), eps))
    return 1.0 - 1.0 / (tau + jnp.log1p(dist))


def _make_boxes(key, n):
    k1, k2, k3 = jax.random.split(key, 3)
    return jnp.concatenate([
        jax.random.uniform(k1, (n, 2), jnp.float32, 0.0, 10.0),
        jax.random.uniform(k2, (n, 2), jnp.float32, 0.5, 3.0),
        jax.random.uniform(k3, (n, 1), jnp.float32, -np.pi, np.pi),
    ], axis=-1)


# ----------------------------------- Main ------------------------------------
if __name__ == "__main__":
    key = jax.random.PRNGKey(0)
    kp, kt, kw, kp2, kt2 = jax.random.split(key, 5)

    loss_mod = GWDLoss(tau=1.0, alpha=1.0, eps=1e-6, reduction='mean', loss_weight=1.0)

    # --- small case: N=8 boxes, weighted + unweighted, mean + none ---
    N = 8
    pred = _make_boxes(kp, N)
    target = _make_boxes(kt, N)
    weight = jax.random.uniform(kw, (N,), jnp.float32, 0.2, 1.0)

    out_mean = loss_mod(pred, target, weight=weight)
    out_none = loss_mod(pred, target, weight=weight, reduction_override='none')
    out_mean_nw = loss_mod(pred, target)                       # weight=None (10-row pack)
    jax.block_until_ready((out_mean, out_none, out_mean_nw))

    ref_elem = _ref_compute_gwd(pred, target, eps=1e-6, alpha=1.0, tau=1.0)
    ref_w = ref_elem * weight
    np.testing.assert_allclose(np.asarray(out_none), np.asarray(ref_w),
                               rtol=1e-3, atol=1e-5)
    np.testing.assert_allclose(np.asarray(out_mean), np.asarray(ref_w.mean()),
                               rtol=1e-3, atol=1e-5)
    np.testing.assert_allclose(np.asarray(out_mean_nw), np.asarray(ref_elem.mean()),
                               rtol=1e-3, atol=1e-5)

    # --- medium case: exercises 32-row chunks, multi-tile grid and the padding mask ---
    N2 = 7000
    pred2 = _make_boxes(kp2, N2)
    target2 = _make_boxes(kt2, N2)
    out_sum2 = loss_mod(pred2, target2, reduction_override='sum')
    jax.block_until_ready(out_sum2)
    ref_sum2 = _ref_compute_gwd(pred2, target2, eps=1e-6, alpha=1.0, tau=1.0).sum()
    np.testing.assert_allclose(np.asarray(out_sum2), np.asarray(ref_sum2),
                               rtol=5e-4, atol=1e-2)

    print("KERNEL_OK")
</pallas_src>

<mosaic_0001>
module attributes {stable_mosaic.version = 11 : i64} {
  func.func @_gwd_sum_kernel(%arg0: i32, %arg1: i32, %arg2: memref<11x8x128xf32, #tpu.memory_space<vmem>>, %arg3: memref<8x128xf32, #tpu.memory_space<vmem>>) attributes {dimension_semantics = [#tpu.dimension_semantics<parallel>, #tpu.dimension_semantics<arbitrary>], iteration_bounds = array<i64: 1, 1>, scalar_prefetch = 0 : i64, scratch_operands = 0 : i64, tpu.core_type = #tpu.core_type<tc>, window_params = [{transform_indices = @transform_0, window_bounds = array<i64: 11, 8, 128>}, {transform_indices = @transform_1, window_bounds = array<i64: 8, 128>}]} {
    %c0_i32 = arith.constant 0 : i32
    %0 = arith.cmpi eq, %arg1, %c0_i32 : i32
    %1 = arith.extui %0 : i1 to i32
    %c0_i32_0 = arith.constant 0 : i32
    %2 = arith.cmpi ne, %1, %c0_i32_0 : i32
    scf.if %2 {
      %cst_37 = arith.constant 0.000000e+00 : f32
      %139 = vector.broadcast %cst_37 : f32 to vector<8x128xf32>
      %c0_38 = arith.constant 0 : index
      %c0_39 = arith.constant 0 : index
      %140 = vector.load %arg3[%c0_38, %c0_39] : memref<8x128xf32, #tpu.memory_space<vmem>>, vector<8x128xf32>
      tpu.vector_store %arg3[%c0_38, %c0_39], %139 {strides = array<i32>} : memref<8x128xf32, #tpu.memory_space<vmem>>, vector<8x128xf32>,
    } else {
    }
    %cst = arith.constant 0.000000e+00 : f32
    %3 = vector.broadcast %cst : f32 to vector<8x128xf32>
    %c0_i32_1 = arith.constant 0 : i32
    %c8_i32 = arith.constant 8 : i32
    %4 = arith.muli %c0_i32_1, %c8_i32 : i32
    %5 = tpu.assume_multiple %4, 8 : i32
    %c0 = arith.constant 0 : index
    %6 = arith.index_cast %5 : i32 to index
    %c0_2 = arith.constant 0 : index
    %7 = vector.load %arg2[%c0, %6, %c0_2] : memref<11x8x128xf32, #tpu.memory_space<vmem>>, vector<1x8x128xf32>
    %8 = vector.shape_cast %7 : vector<1x8x128xf32> to vector<8x128xf32>
    %c5 = arith.constant 5 : index
    %9 = arith.index_cast %5 : i32 to index
    %c0_3 = arith.constant 0 : index
    %10 = vector.load %arg2[%c5, %9, %c0_3] : memref<11x8x128xf32, #tpu.memory_space<vmem>>, vector<1x8x128xf32>
    %11 = vector.shape_cast %10 : vector<1x8x128xf32> to vector<8x128xf32>
    %12 = arith.subf %8, %11 : vector<8x128xf32>
    %c1 = arith.constant 1 : index
    %13 = arith.index_cast %5 : i32 to index
    %c0_4 = arith.constant 0 : index
    %14 = vector.load %arg2[%c1, %13, %c0_4] : memref<11x8x128xf32, #tpu.memory_space<vmem>>, vector<1x8x128xf32>
    %15 = vector.shape_cast %14 : vector<1x8x128xf32> to vector<8x128xf32>
    %c6 = arith.constant 6 : index
    %16 = arith.index_cast %5 : i32 to index
    %c0_5 = arith.constant 0 : index
    %17 = vector.load %arg2[%c6, %16, %c0_5] : memref<11x8x128xf32, #tpu.memory_space<vmem>>, vector<1x8x128xf32>
    %18 = vector.shape_cast %17 : vector<1x8x128xf32> to vector<8x128xf32>
    %19 = arith.subf %15, %18 : vector<8x128xf32>
    %20 = arith.mulf %12, %12 : vector<8x128xf32>
    %21 = arith.mulf %19, %19 : vector<8x128xf32>
    %22 = arith.addf %20, %21 : vector<8x128xf32>
    %c2 = arith.constant 2 : index
    %23 = arith.index_cast %5 : i32 to index
    %c0_6 = arith.constant 0 : index
    %24 = vector.load %arg2[%c2, %23, %c0_6] : memref<11x8x128xf32, #tpu.memory_space<vmem>>, vector<1x8x128xf32>
    %25 = vector.shape_cast %24 : vector<1x8x128xf32> to vector<8x128xf32>
    %cst_7 = arith.constant 9.99999997E-7 : f32
    %26 = vector.broadcast %cst_7 : f32 to vector<8x128xf32>
    %27 = arith.maximumf %25, %26 : vector<8x128xf32>
    %c3 = arith.constant 3 : index
    %28 = arith.index_cast %5 : i32 to index
    %c0_8 = arith.constant 0 : index
    %29 = vector.load %arg2[%c3, %28, %c0_8] : memref<11x8x128xf32, #tpu.memory_space<vmem>>, vector<1x8x128xf32>
    %30 = vector.shape_cast %29 : vector<1x8x128xf32> to vector<8x128xf32>
    %cst_9 = arith.constant 9.99999997E-7 : f32
    %31 = vector.broadcast %cst_9 : f32 to vector<8x128xf32>
    %32 = arith.maximumf %30, %31 : vector<8x128xf32>
    %c7 = arith.constant 7 : index
    %33 = arith.index_cast %5 : i32 to index
    %c0_10 = arith.constant 0 : index
    %34 = vector.load %arg2[%c7, %33, %c0_10] : memref<11x8x128xf32, #tpu.memory_space<vmem>>, vector<1x8x128xf32>
    %35 = vector.shape_cast %34 : vector<1x8x128xf32> to vector<8x128xf32>
    %cst_11 = arith.constant 9.99999997E-7 : f32
    %36 = vector.broadcast %cst_11 : f32 to vector<8x128xf32>
    %37 = arith.maximumf %35, %36 : vector<8x128xf32>
    %c8 = arith.constant 8 : index
    %38 = arith.index_cast %5 : i32 to index
    %c0_12 = arith.constant 0 : index
    %39 = vector.load %arg2[%c8, %38, %c0_12] : memref<11x8x128xf32, #tpu.memory_space<vmem>>, vector<1x8x128xf32>
    %40 = vector.shape_cast %39 : vector<1x8x128xf32> to vector<8x128xf32>
    %cst_13 = arith.constant 9.99999997E-7 : f32
    %41 = vector.broadcast %cst_13 : f32 to vector<8x128xf32>
    %42 = arith.maximumf %40, %41 : vector<8x128xf32>
    %43 = arith.mulf %27, %32 : vector<8x128xf32>
    %cst_14 = arith.constant 6.250000e-02 : f32
    %44 = vector.broadcast %cst_14 : f32 to vector<8x128xf32>
    %45 = arith.mulf %44, %43 : vector<8x128xf32>
    %46 = arith.mulf %37, %42 : vector<8x128xf32>
    %47 = arith.mulf %45, %46 : vector<8x128xf32>
    %cst_15 = arith.constant 2.500000e-01 : f32
    %48 = vector.broadcast %cst_15 : f32 to vector<8x128xf32>
    %49 = arith.mulf %48, %27 : vector<8x128xf32>
    %50 = arith.mulf %49, %27 : vector<8x128xf32>
    %cst_16 = arith.constant 2.500000e-01 : f32
    %51 = vector.broadcast %cst_16 : f32 to vector<8x128xf32>
    %52 = arith.mulf %51, %32 : vector<8x128xf32>
    %53 = arith.mulf %52, %32 : vector<8x128xf32>
    %cst_17 = arith.constant 2.500000e-01 : f32
    %54 = vector.broadcast %cst_17 : f32 to vector<8x128xf32>
    %55 = arith.mulf %54, %37 : vector<8x128xf32>
    %56 = arith.mulf %55, %37 : vector<8x128xf32>
    %cst_18 = arith.constant 2.500000e-01 : f32
    %57 = vector.broadcast %cst_18 : f32 to vector<8x128xf32>
    %58 = arith.mulf %57, %42 : vector<8x128xf32>
    %59 = arith.mulf %58, %42 : vector<8x128xf32>
    %c4 = arith.constant 4 : index
    %60 = arith.index_cast %5 : i32 to index
    %c0_19 = arith.constant 0 : index
    %61 = vector.load %arg2[%c4, %60, %c0_19] : memref<11x8x128xf32, #tpu.memory_space<vmem>>, vector<1x8x128xf32>
    %62 = vector.shape_cast %61 : vector<1x8x128xf32> to vector<8x128xf32>
    %c9 = arith.constant 9 : index
    %63 = arith.index_cast %5 : i32 to index
    %c0_20 = arith.constant 0 : index
    %64 = vector.load %arg2[%c9, %63, %c0_20] : memref<11x8x128xf32, #tpu.memory_space<vmem>>, vector<1x8x128xf32>
    %65 = vector.shape_cast %64 : vector<1x8x128xf32> to vector<8x128xf32>
    %66 = math.cos %62 : vector<8x128xf32>
    %67 = math.sin %62 : vector<8x128xf32>
    %68 = math.cos %65 : vector<8x128xf32>
    %69 = math.sin %65 : vector<8x128xf32>
    %70 = arith.mulf %66, %66 : vector<8x128xf32>
    %71 = arith.mulf %67, %67 : vector<8x128xf32>
    %72 = arith.mulf %66, %67 : vector<8x128xf32>
    %73 = arith.mulf %68, %68 : vector<8x128xf32>
    %74 = arith.mulf %69, %69 : vector<8x128xf32>
    %75 = arith.mulf %68, %69 : vector<8x128xf32>
    %76 = arith.mulf %50, %70 : vector<8x128xf32>
    %77 = arith.mulf %53, %71 : vector<8x128xf32>
    %78 = arith.addf %76, %77 : vector<8x128xf32>
    %79 = arith.subf %50, %53 : vector<8x128xf32>
    %80 = arith.mulf %79, %72 : vector<8x128xf32>
    %81 = arith.mulf %50, %71 : vector<8x128xf32>
    %82 = arith.mulf %53, %70 : vector<8x128xf32>
    %83 = arith.addf %81, %82 : vector<8x128xf32>
    %84 = arith.mulf %56, %73 : vector<8x128xf32>
    %85 = arith.mulf %59, %74 : vector<8x128xf32>
    %86 = arith.addf %84, %85 : vector<8x128xf32>
    %87 = arith.subf %56, %59 : vector<8x128xf32>
    %88 = arith.mulf %87, %75 : vector<8x128xf32>
    %89 = arith.mulf %56, %74 : vector<8x128xf32>
    %90 = arith.mulf %59, %73 : vector<8x128xf32>
    %91 = arith.addf %89, %90 : vector<8x128xf32>
    %92 = arith.mulf %78, %86 : vector<8x128xf32>
    %93 = arith.mulf %80, %88 : vector<8x128xf32>
    %cst_21 = arith.constant 2.000000e+00 : f32
    %94 = vector.broadcast %cst_21 : f32 to vector<8x128xf32>
    %95 = arith.mulf %94, %93 : vector<8x128xf32>
    %96 = arith.addf %92, %95 : vector<8x128xf32>
    %97 = arith.mulf %83, %91 : vector<8x128xf32>
    %98 = arith.addf %96, %97 : vector<8x128xf32>
    %99 = arith.addf %50, %53 : vector<8x128xf32>
    %100 = arith.addf %56, %59 : vector<8x128xf32>
    %101 = arith.addf %99, %100 : vector<8x128xf32>
    %cst_22 = arith.constant 2.000000e+00 : f32
    %102 = vector.broadcast %cst_22 : f32 to vector<8x128xf32>
    %103 = arith.mulf %102, %47 : vector<8x128xf32>
    %104 = arith.addf %98, %103 : vector<8x128xf32>
    %cst_23 = arith.constant 0.000000e+00 : f32
    %105 = vector.broadcast %cst_23 : f32 to vector<8x128xf32>
    %106 = arith.maximumf %104, %105 : vector<8x128xf32>
    %107 = math.sqrt %106 : vector<8x128xf32>
    %cst_24 = arith.constant 2.000000e+00 : f32
    %108 = vector.broadcast %cst_24 : f32 to vector<8x128xf32>
    %109 = arith.mulf %108, %107 : vector<8x128xf32>
    %110 = arith.subf %101, %109 : vector<8x128xf32>
    %111 = arith.addf %22, %110 : vector<8x128xf32>
    %cst_25 = arith.constant 0.000000e+00 : f32
    %112 = vector.broadcast %cst_25 : f32 to vector<8x128xf32>
    %113 = arith.maximumf %111, %112 : vector<8x128xf32>
    %114 = math.sqrt %113 : vector<8x128xf32>
    %115 = math.rsqrt %47 : vector<8x128xf32>
    %116 = math.sqrt %115 : vector<8x128xf32>
    %cst_26 = arith.constant 1.000000e+06 : f32
    %117 = vector.broadcast %cst_26 : f32 to vector<8x128xf32>
    %118 = arith.minimumf %116, %117 : vector<8x128xf32>
    %cst_27 = arith.constant 5.000000e-01 : f32
    %119 = vector.broadcast %cst_27 : f32 to vector<8x128xf32>
    %120 = arith.mulf %119, %118 : vector<8x128xf32>
    %121 = arith.mulf %114, %120 : vector<8x128xf32>
    %122 = math.log1p %121 : vector<8x128xf32>
    %cst_28 = arith.constant 1.000000e+00 : f32
    %123 = vector.broadcast %cst_28 : f32 to vector<8x128xf32>
    %124 = arith.addf %123, %122 : vector<8x128xf32>
    %cst_29 = arith.constant 1.000000e+00 : f32
    %125 = vector.broadcast %cst_29 : f32 to vector<8x128xf32>
    %126 = arith.divf %125, %124 : vector<8x128xf32>
    %cst_30 = arith.constant 1.000000e+00 : f32
    %127 = vector.broadcast %cst_30 : f32 to vector<8x128xf32>
    %128 = arith.subf %127, %126 : vector<8x128xf32>
    %c10 = arith.constant 10 : index
    %129 = arith.index_cast %5 : i32 to index
    %c0_31 = arith.constant 0 : index
    %130 = vector.load %arg2[%c10, %129, %c0_31] : memref<11x8x128xf32, #tpu.memory_space<vmem>>, vector<1x8x128xf32>
    %131 = vector.shape_cast %130 : vector<1x8x128xf32> to vector<8x128xf32>
    %132 = arith.mulf %128, %131 : vector<8x128xf32>
    %133 = vector.shape_cast %132 : vector<8x128xf32> to vector<1x8x128xf32>
    %cst_32 = arith.constant dense<0.000000e+00> : vector<8x128xf32>
    %134 = vector.multi_reduction <add>, %133, %cst_32 [0] : vector<1x8x128xf32> to vector<8x128xf32>
    %135 = arith.addf %3, %134 : vector<8x128xf32>
    %c1_i32 = arith.constant 1 : i32
    %c0_33 = arith.constant 0 : index
    %c0_34 = arith.constant 0 : index
    %136 = vector.load %arg3[%c0_33, %c0_34] : memref<8x128xf32, #tpu.memory_space<vmem>>, vector<8x128xf32>
    %137 = arith.addf %136, %135 : vector<8x128xf32>
    %c0_35 = arith.constant 0 : index
    %c0_36 = arith.constant 0 : index
    %138 = vector.load %arg3[%c0_35, %c0_36] : memref<8x128xf32, #tpu.memory_space<vmem>>, vector<8x128xf32>
    tpu.vector_store %arg3[%c0_35, %c0_36], %137 {strides = array<i32>} : memref<8x128xf32, #tpu.memory_space<vmem>>, vector<8x128xf32>,
    return
  }
  func.func @transform_0(%arg0: i32, %arg1: i32) -> (i32, i32, i32) {
    %c1_i32 = arith.constant 1 : i32
    %0 = arith.muli %arg0, %c1_i32 : i32
    %1 = arith.addi %0, %arg1 : i32
    %c0_i32 = arith.constant 0 : i32
    %c0_i32_0 = arith.constant 0 : i32
    %c0_i32_1 = arith.constant 0 : i32
    return %c0_i32, %1, %c0_i32_0 : i32, i32, i32
  }
  func.func @transform_1(%arg0: i32, %arg1: i32) -> (i32, i32) {
    %c0_i32 = arith.constant 0 : i32
    %c0_i32_0 = arith.constant 0 : i32
    return %arg0, %c0_i32 : i32, i32
  }
}

</mosaic_0001>

<bundles_post_ra>
// kernel: gwd_loss_sum.1
= control target key start
LH: loop header
LB: loop body
LE: loop exit
PB: predicated region body
PF: predicated region fallthrough
CT: control target
= control target key end

     0   :  { %v659_v21 = vmov 683565275   ;;  %v660_v23 = vmov 2475754826   ;;  %v661_v25 = vmov 2131351028   ;;  %s800_s0 = inlined_call_operand.vmem [shape: f32[11,8,128], index: 0, kind: input, shape index: {}]   ;;  %s801_s1 = inlined_call_operand.vmem [shape: f32[8,128], index: 1, kind: output, shape index: {}]  }
   0x1   :  { %v678_v0 = vld [vmem:[%s800_s0 + $0x20] sm:$0xff]  ;;  %v683_v1 = vld [vmem:[%s800_s0 + $0x48] sm:$0xff]  ;;  %v662_v27 = vmov 2102212464   ;;  %v663_v29 = vmov 920167782  }
   0x2   :  { %v79_v2 = vand.u32 2147483647, %v678_v0  ;;  %v82_v3 = vand.u32 2139095040, %v678_v0  ;;  %v289_v5 = vand.u32 2139095040, %v683_v1  ;;  %v286_v7 = vand.u32 2147483647, %v683_v1 }
   0x3   :  { %v664_v37 = vmov 1326507024   ;;  %vm81_vm14 = vcmp.lt.s32.totalorder %v678_v0, 0 }
   0x4   :  { %v83_v4 = vshrl.u32 %v82_v3, 23  ;;  %v86_v6 = vand.u32 8388607, %v79_v2  ;;  %v290_v9 = vshrl.u32 %v289_v5, 23  ;;  %v693_v13 = vand.u32 8388607, %v286_v7 }
   0x5   :  { %vm80_vm15 = vcmp.le.f32.partialorder %v79_v2, 0.7853982  ;;  %v601_v2 = vld [vmem:[%s800_s0 + $0x10] sm:$0xff] }
   0x6   :  { %v607_v8 = vadd.s32 4294967169, %v83_v4  ;;  %v615_v11 = vadd.s32 4294967169, %v290_v9  ;;  %v87_v12 = vor.u32 8388608, %v86_v6  ;;  %v294_v19 = vor.u32 8388608, %v693_v13 }
   0x8   :  { %v89_v10 = vadd.s32 1, %v607_v8  ;;  %v296_v14 = vadd.s32 1, %v615_v11  ;;  %v695_v18 = vshll.u32 %v87_v12, 8 }
   0xa   :  { %vm90_vm0 = vcmp.gt.s32.totalorder %v89_v10, 0  ;;  %vm297_vm1 = vcmp.gt.s32.totalorder %v296_v14, 0 }
   0xb   :  { %v91_v15 = vsel %vm90_vm0, %v89_v10, 0  ;;  %v298_v31 = vsel %vm297_vm1, %v296_v14, 0  ;;  %vm288_vm0 = vcmp.lt.s32.totalorder %v683_v1, 0  ;;  %vm287_vm1 = vcmp.le.f32.partialorder %v286_v7, 0.7853982 }
   0xc   :  { %v92_v16 = vshrl.u32 %v91_v15, 5  ;;  %v93_v17 = vand.u32 31, %v91_v15  ;;  %v299_v44 = vshrl.u32 %v298_v31, 5  ;;  %v300_v45 = vand.u32 31, %v298_v31 }
   0xe   :  { %v94_v20 = vsub.s32 32, %v93_v17  ;;  %v96_v22 = vshll.u32 %v659_v21, %v93_v17  ;;  %v99_v24 = vshll.u32 %v660_v23, %v93_v17  ;;  %v102_v26 = vshll.u32 %v661_v25, %v93_v17 }
   0xf   :  { %v105_v28 = vshll.u32 %v662_v27, %v93_v17  ;;  %v108_v30 = vshll.u32 %v663_v29, %v93_v17  ;;  %vm111_vm2 = vcmp.lt.s32.totalorder %v92_v16, 1  ;;  %vm112_vm3 = vcmp.lt.s32.totalorder %v92_v16, 2 }
  0x10   :  { %v95_v32 = vshrl.u32 %v659_v21, %v94_v20  ;;  %v97_v33 = vshrl.u32 %v660_v23, %v94_v20  ;;  %v100_v34 = vshrl.u32 %v661_v25, %v94_v20  ;;  %v103_v35 = vshrl.u32 %v662_v27, %v94_v20 }
  0x11   :  { %v106_v36 = vshrl.u32 %v663_v29, %v94_v20  ;;  %v109_v38 = vshrl.u32 %v664_v37, %v94_v20  ;;  %vm113_vm4 = vcmp.lt.s32.totalorder %v92_v16, 3  ;;  %vm114_vm5 = vcmp.lt.s32.totalorder %v92_v16, 4 }
  0x12   :  { %v98_v39 = vor.u32 %v97_v33, %v96_v22  ;;  %v101_v40 = vor.u32 %v100_v34, %v99_v24  ;;  %v104_v41 = vor.u32 %v103_v35, %v102_v26  ;;  %v301_v53 = vsub.s32 32, %v300_v45 }
  0x13   :  { %v107_v42 = vor.u32 %v106_v36, %v105_v28  ;;  %v110_v43 = vor.u32 %v109_v38, %v108_v30  ;;  %v303_v57 = vshll.u32 %v659_v21, %v300_v45  ;;  %v306_v6 = vshll.u32 %v660_v23, %v300_v45 }
  0x14   :  { %v115_v46 = vsel %vm111_vm2, %v95_v32, %v98_v39  ;;  %v116_v47 = vsel %vm114_vm5, %v104_v41, 2102212464  ;;  %v119_v48 = vsel %vm111_vm2, %v98_v39, %v101_v40  ;;  %v123_v49 = vsel %vm111_vm2, %v101_v40, %v104_v41 }
  0x15   :  { %v117_v50 = vsel %vm113_vm4, %v101_v40, %v116_v47  ;;  %v120_v51 = vsel %vm114_vm5, %v107_v42, 920167782  ;;  %v124_v52 = vsel %vm114_vm5, %v110_v43, 1326507024  ;;  %v302_v61 = vshrl.u32 %v659_v21, %v301_v53 }
  0x16   :  { %v118_v54 = vsel %vm112_vm3, %v115_v46, %v117_v50  ;;  %v121_v55 = vsel %vm113_vm4, %v104_v41, %v120_v51  ;;  %v125_v56 = vsel %vm113_vm4, %v107_v42, %v124_v52  ;;  %v304_v5 = vshrl.u32 %v660_v23, %v301_v53 }
  0x17   :  { %v122_v58 = vsel %vm112_vm3, %v119_v48, %v121_v55  ;;  %v126_v59 = vsel %vm112_vm3, %v123_v49, %v125_v56  ;;  %v134_v60 = vmul.u32 %v695_v18, %v118_v54  ;;  %v307_v8 = vshrl.u32 %v661_v25, %v301_v53 }
  0x18   :  { %v709_v62 = vmul.u32.u64.low %v695_v18, %v126_v59  ;;  %v710_v63 = vmul.u32.u64.high %v695_v18, %v126_v59, %v709_v62  ;;  %v713_v3 = vmul.u32.u64.low %v695_v18, %v122_v58  ;;  %v714_v4 = vmul.u32.u64.high %v695_v18, %v122_v58, %v713_v3 }
  0x19   :  { %v309_v9 = vshll.u32 %v661_v25, %v300_v45  ;;  %v310_v10 = vshrl.u32 %v662_v27, %v301_v53  ;;  %v312_v11 = vshll.u32 %v662_v27, %v300_v45  ;;  %v313_v12 = vshrl.u32 %v663_v29, %v301_v53 }
  0x1a   :  { %v315_v14 = vshll.u32 %v663_v29, %v300_v45  ;;  %v305_v15 = vor.u32 %v304_v5, %v303_v57  ;;  %v308_v16 = vor.u32 %v307_v8, %v306_v6  ;;  %v316_v17 = vshrl.u32 %v664_v37, %v301_v53 }
  0x1b   :  { %vm318_vm6 = vcmp.lt.s32.totalorder %v299_v44, 1  ;;  %vm136_vm7 = vc.u32 %v710_v63, %v713_v3  ;;  %v137_v20 = vadd.s32 1, %v714_v4  ;;  %v311_v21 = vor.u32 %v310_v10, %v309_v9 }
  0x1c   :  { %v334_v18 = vshll.u32 %v294_v19, 8  ;;  %v314_v22 = vor.u32 %v313_v12, %v312_v11  ;;  %v317_v23 = vor.u32 %v316_v17, %v315_v14  ;;  %vm319_vm8 = vcmp.lt.s32.totalorder %v299_v44, 2 }
  0x1d   :  { %vm320_vm9 = vcmp.lt.s32.totalorder %v299_v44, 3  ;;  %v138_v24 = vsel %vm136_vm7, %v137_v20, %v714_v4  ;;  %vm321_vm10 = vcmp.lt.s32.totalorder %v299_v44, 4  ;;  %v322_v25 = vsel %vm318_vm6, %v302_v61, %v305_v15 }
  0x1e   :  { %v326_v26 = vsel %vm318_vm6, %v305_v15, %v308_v16  ;;  %v139_v27 = vadd.s32 %v138_v24, %v134_v60  ;;  %v323_v28 = vsel %vm321_vm10, %v311_v21, 2102212464  ;;  %v327_v29 = vsel %vm321_vm10, %v314_v22, 920167782 }
  0x1f   :  { %v330_v30 = vsel %vm318_vm6, %v308_v16, %v311_v21  ;;  %v324_v31 = vsel %vm320_vm9, %v308_v16, %v323_v28  ;;  %v328_v32 = vsel %vm320_vm9, %v311_v21, %v327_v29  ;;  %v331_v13 = vsel %vm321_vm10, %v317_v23, 1326507024 }
  0x20   :  { %v140_v19 = vadd.s32 536870912, %v139_v27  ;;  %v329_v33 = vsel %vm319_vm8, %v326_v26, %v328_v32  ;;  %v332_v34 = vsel %vm320_vm9, %v314_v22, %v331_v13  ;;  %v325_v35 = vsel %vm319_vm8, %v322_v25, %v324_v31 }
  0x21   :  { %v333_v36 = vsel %vm319_vm8, %v330_v30, %v332_v34  ;;  %v727_v37 = vmul.u32.u64.low %v334_v18, %v329_v33  ;;  %v728_v38 = vmul.u32.u64.high %v334_v18, %v329_v33, %v727_v37  ;;  %v341_v43 = vmul.u32 %v334_v18, %v325_v35  ;;  %v602_v34 = vld [vmem:[%s800_s0 + $0x18] sm:$0xff] }
  0x22   :  { %v141_v39 = vshrl.u32 %v140_v19, 30  ;;  %v730_v40 = vmul.u32.u64.low %v334_v18, %v333_v36  ;;  %v731_v41 = vmul.u32.u64.high %v334_v18, %v333_v36, %v730_v40  ;;  %v135_v55 = vadd.s32 %v713_v3, %v710_v63  ;;  %v603_v35 = vld [vmem:[%s800_s0 + $0x38] sm:$0xff] }
  0x23   :  { %v344_v45 = vadd.s32 1, %v728_v38  ;;  %v48_v40 = vmax.f32 %v601_v2, 1e-06  ;;  %vm171_vm8 = vweird.f32 %v678_v0 }
  0x24   :  { %v142_v42 = vshll.u32 %v141_v39, 30  ;;  %vm343_vm11 = vc.u32 %v731_v41, %v727_v37  ;;  %v165_v15 = vsub.s32 4, %v141_v39  ;;  %v342_v63 = vadd.s32 %v727_v37, %v731_v41 }
  0x25   :  { %v345_v47 = vsel %vm343_vm11, %v344_v45, %v728_v38  ;;  %v52_v41 = vmax.f32 %v602_v34, 1e-06 }
  0x26   :  { %v143_v46 = vsub.s32 %v139_v27, %v142_v42  ;;  %v346_v49 = vadd.s32 %v345_v47, %v341_v43  ;;  %v166_v22 = vsel %vm81_vm14, %v165_v15, %v141_v39  ;;  %v56_v42 = vmax.f32 %v603_v35, 1e-06 }
  0x27   :  { %v168_v27 = vsel %vm80_vm15, 0, %v166_v22 }
  0x28   :  { %v145_v48 = vsub.s32 0, %v143_v46  ;;  %v347_v50 = vadd.s32 536870912, %v346_v49  ;;  %v275_v32 = vadd.s32 3, %v168_v27  ;;  %v172_v36 = vand.u32 3, %v168_v27 }
  0x2a   :  { %v608_v44 = vmin.u32 %v145_v48, %v143_v46  ;;  %v348_v52 = vshrl.u32 %v347_v50, 30  ;;  %v276_v37 = vand.u32 3, %v275_v32  ;;  %vm177_vm2 = vcmp.eq.s32.totalorder %v172_v36, 2 }
  0x2b   :  { %vm174_vm4 = vcmp.eq.s32.totalorder %v172_v36, 0  ;;  %vm173_vm6 = vcmp.lt.s32.totalorder %v172_v36, 2 }
  0x2c   :  { %v147_v51 = vclz %v608_v44  ;;  %v349_v54 = vshll.u32 %v348_v52, 30  ;;  %v372_v19 = vsub.s32 4, %v348_v52  ;;  %vm281_vm3 = vcmp.eq.s32.totalorder %v276_v37, 2 }
  0x2d   :  { %vm278_vm5 = vcmp.eq.s32.totalorder %v276_v37, 0  ;;  %vm277_vm7 = vcmp.lt.s32.totalorder %v276_v37, 2 }
  0x2e   :  { %v609_v53 = vadd.s32 4294967294, %v147_v51  ;;  %v350_v57 = vsub.s32 %v346_v49, %v349_v54  ;;  %v373_v39 = vsel %vm288_vm0, %v372_v19, %v348_v52  ;;  %v604_v49 = vld [vmem:[%s800_s0 + $0x40] sm:$0xff] }
  0x2f   :  { %v375_v47 = vsel %vm287_vm1, 0, %v373_v39 }
  0x30   :  { %vm610_vm12 = vcmp.lt.s32.totalorder %v609_v53, 0  ;;  %v352_v61 = vsub.s32 0, %v350_v57  ;;  %v482_v52 = vadd.s32 3, %v375_v47 }
  0x31   :  { %v150_v56 = vsel %vm610_vm12, 0, %v609_v53  ;;  %v60_v53 = vmax.f32 %v604_v49, 1e-06 }
  0x32   :  { %v151_v58 = vsub.s32 32, %v150_v56  ;;  %v152_v59 = vshll.u32 %v143_v46, %v150_v56  ;;  %v155_v60 = vsub.s32 4294967266, %v150_v56  ;;  %v616_v5 = vmin.u32 %v352_v61, %v350_v57 }
  0x33   :  { %v379_v61 = vand.u32 3, %v375_v47 }
  0x34   :  { %v153_v62 = vshrl.u32 %v135_v55, %v151_v58  ;;  %v156_v4 = vadd.s32 127, %v155_v60  ;;  %v354_v9 = vclz %v616_v5  ;;  %v65_v58 = vmul.f32 0.25, %v48_v40 }
  0x35   :  { %v69_v60 = vmul.f32 0.25, %v56_v42  ;;  %vm384_vm9 = vcmp.eq.s32.totalorder %v379_v61, 2  ;;  %vm381_vm11 = vcmp.eq.s32.totalorder %v379_v61, 0 }
  0x36   :  { %v154_v6 = vor.u32 %v153_v62, %v152_v59  ;;  %v157_v8 = vshll.u32 %v156_v4, 23  ;;  %v617_v12 = vadd.s32 4294967294, %v354_v9  ;;  %v67_v59 = vmul.f32 0.25, %v52_v41 }
  0x37   :  { %v483_v62 = vand.u32 3, %v482_v52  ;;  %v71_v4 = vmul.f32 0.25, %v60_v53  ;;  %v63_v9 = vmul.f32 %v60_v53, %v56_v42 }
  0x38   :  { %v158_v10 = vor.u32 4788187, %v157_v8  ;;  %v161_v11 = vcvt.s32.f32 %v154_v6  ;;  %vm618_vm13 = vcmp.lt.s32.totalorder %v617_v12, 0  ;;  %v61_v8 = vmul.f32 %v52_v41, %v48_v40 }
  0x39   :  { %v357_v16 = vsel %vm618_vm13, 0, %v617_v12  ;;  %v763_v12 = vmul.f32 %v69_v60, %v56_v42  ;;  %vm488_vm10 = vcmp.eq.s32.totalorder %v483_v62, 2  ;;  %vm485_vm12 = vcmp.eq.s32.totalorder %v483_v62, 0 }
  0x3a   :  { %v159_v14 = vand.u32 2147483647, %v158_v10  ;;  %v358_v17 = vsub.s32 32, %v357_v16  ;;  %v359_v20 = vshll.u32 %v350_v57, %v357_v16  ;;  %v362_v21 = vsub.s32 4294967266, %v357_v16 }
  0x3b   :  { %v759_v10 = vmul.f32 %v65_v58, %v48_v40  ;;  %vm378_vm13 = vweird.f32 %v683_v1  ;;  %v62_v27 = vmul.f32 0.0625, %v61_v8 }
  0x3c   :  { %v162_v3 = vmul.f32 %v161_v11, %v159_v14  ;;  %v360_v23 = vshrl.u32 %v342_v63, %v358_v17  ;;  %v363_v24 = vadd.s32 127, %v362_v21  ;;  %v761_v11 = vmul.f32 %v67_v59, %v52_v41 }
  0x3e   :  { %v163_v18 = vxor.u32 2147483648, %v162_v3  ;;  %v361_v28 = vor.u32 %v360_v23, %v359_v20  ;;  %v364_v29 = vshll.u32 %v363_v24, 23  ;;  %v502_v22 = vsub.f32 %v759_v10, %v761_v11 }
  0x3f   :  { %v521_v60 = vadd.f32 %v761_v11, %v759_v10 }
  0x40   :  { %v164_v25 = vsel %vm81_vm14, %v163_v18, %v162_v3  ;;  %v365_v30 = vor.u32 4788187, %v364_v29  ;;  %v368_v31 = vcvt.s32.f32 %v361_v28  ;;  %v72_v3 = vmul.f32 %v71_v4, %v60_v53  ;;  %v30_v53 = vld [vmem:[%s800_s0] sm:$0xff] }
  0x41   :  { %v167_v26 = vsel %vm80_vm15, %v678_v0, %v164_v25  ;;  %vm380_vm14 = vcmp.lt.s32.totalorder %v379_v61, 2  ;;  %vm484_vm15 = vcmp.lt.s32.totalorder %v483_v62, 2 }
  0x42   :  { %639 = vcosq.f32 %v167_v26  ;;  %v366_v13 = vand.u32 2147483647, %v365_v30  ;;  %v510_v30 = vsub.f32 %v763_v12, %v72_v3  ;;  %v522_v61 = vadd.f32 %v72_v3, %v763_v12 }
  0x43   :  { %641 = vsinq.f32 %v167_v26 }
  0x44   :  { %v369_v33 = vmul.f32 %v368_v31, %v366_v13 }
  0x46   :  { %v370_v38 = vxor.u32 2147483648, %v369_v33 }
  0x48   :  { %v371_v43 = vsel %vm288_vm0, %v370_v38, %v369_v33 }
  0x49   :  { %v374_v46 = vsel %vm287_vm1, %v683_v1, %v371_v43  ;;  %v64_v43 = vmul.f32 %v63_v9, %v62_v27  ;;  %v523_v9 = vadd.f32 %v522_v61, %v521_v60 }
  0x4a   :  { %643 = vcosq.f32 %v374_v46 }
  0x4b   :  { %645 = vsinq.f32 %v374_v46 }
  0x4c   :  { %v640_v45 = vpop.eup %639  ;;  %647 = vrsqrt.f32 %v64_v43 }
  0x4d   :  { %v642_v48 = vpop.eup %641  ;;  %v178_v44 = vxor.u32 2147483648, %v640_v45 }
  0x4e   :  { %v175_v7 = vxor.u32 2147483648, %v642_v48 }
  0x4f   :  { %v179_v50 = vsel %vm177_vm2, %v178_v44, %v642_v48  ;;  %v283_v51 = vsel %vm281_vm3, %v178_v44, %v642_v48 }
  0x50   :  { %v176_v54 = vsel %vm174_vm4, %v640_v45, %v175_v7  ;;  %v280_v55 = vsel %vm278_vm5, %v640_v45, %v175_v7  ;;  %v524_v7 = vmul.f32 2.0, %v64_v43 }
  0x51   :  { %v180_v56 = vsel %vm173_vm6, %v176_v54, %v179_v50  ;;  %v284_v57 = vsel %vm277_vm7, %v280_v55, %v283_v51  ;;  %v598_v55 = vld [vmem:[%s800_s0 + $0x28] sm:$0xff] }
  0x52   :  { %v181_v5 = vsel %vm171_vm8, nan, %v180_v56  ;;  %v285_v6 = vsel %vm171_vm8, nan, %v284_v57  ;;  %v599_v56 = vld [vmem:[%s800_s0 + $0x8] sm:$0xff]  ;;  %v600_v57 = vld [vmem:[%s800_s0 + $0x30] sm:$0xff]  ;;  %v34_v58 = vsub.f32 %v30_v53, %v598_v55 }
  0x53   :  { %v493_v0 = vmul.f32 %v181_v5, %v181_v5  ;;  %v494_v15 = vmul.f32 %v285_v6, %v285_v6  ;;  %v495_v18 = vmul.f32 %v285_v6, %v181_v5  ;;  %v41_v59 = vsub.f32 %v599_v56, %v600_v57 }
  0x54   :  { %v644_v14 = vpop.eup %643  ;;  %v42_v5 = vmul.f32 %v34_v58, %v34_v58 }
  0x55   :  { %v646_v63 = vpop.eup %645  ;;  %v385_v16 = vxor.u32 2147483648, %v644_v14  ;;  %v499_v25 = vmul.f32 %v493_v0, %v759_v10  ;;  %v500_v26 = vmul.f32 %v494_v15, %v761_v11  ;;  %v504_v13 = vmul.f32 %v494_v15, %v759_v10 }
  0x56   :  { %v382_v17 = vxor.u32 2147483648, %v646_v63  ;;  %v505_v19 = vmul.f32 %v493_v0, %v761_v11  ;;  %v503_v35 = vmul.f32 %v502_v22, %v495_v18  ;;  %v648_v54 = vpop.eup %647  ;;  %v43_v6 = vmul.f32 %v41_v59, %v41_v59 }
  0x57   :  { %v386_v20 = vsel %vm384_vm9, %v385_v16, %v646_v63  ;;  %v490_v21 = vsel %vm488_vm10, %v385_v16, %v646_v63  ;;  %v501_v36 = vadd.f32 %v500_v26, %v499_v25  ;;  %vm548_vm2 = vcmp.eq.f32.partialorder %v648_v54, inf }
  0x58   :  { %v383_v23 = vsel %vm381_vm11, %v644_v14, %v382_v17  ;;  %v487_v24 = vsel %vm485_vm12, %v644_v14, %v382_v17  ;;  %v506_v41 = vadd.f32 %v505_v19, %v504_v13  ;;  %v44_v15 = vadd.f32 %v43_v6, %v42_v5 }
  0x59   :  { %v387_v28 = vsel %vm380_vm14, %v383_v23, %v386_v20  ;;  %v491_v29 = vsel %vm484_vm15, %v487_v24, %v490_v21  ;;  %v551_v10 = vand.u32 2147483648, %v648_v54  ;;  %vm550_vm3 = vcmp.eq.f32.partialorder %v648_v54, 0.0 }
  0x5a   :  { %v388_v31 = vsel %vm378_vm13, nan, %v387_v28  ;;  %v492_v32 = vsel %vm378_vm13, nan, %v491_v29 }
  0x5b   :  { %v496_v33 = vmul.f32 %v388_v31, %v388_v31  ;;  %v497_v2 = vmul.f32 %v492_v32, %v492_v32  ;;  %v498_v34 = vmul.f32 %v492_v32, %v388_v31 }
  0x5d   :  { %v507_v37 = vmul.f32 %v496_v33, %v763_v12  ;;  %v508_v38 = vmul.f32 %v497_v2, %v72_v3  ;;  %v511_v39 = vmul.f32 %v510_v30, %v498_v34  ;;  %v512_v40 = vmul.f32 %v497_v2, %v763_v12 }
  0x5e   :  { %v513_v42 = vmul.f32 %v496_v33, %v72_v3 }
  0x5f   :  { %v509_v1 = vadd.f32 %v508_v38, %v507_v37  ;;  %v516_v45 = vmul.f32 %v511_v39, %v503_v35 }
  0x60   :  { %v514_v46 = vadd.f32 %v513_v42, %v512_v40 }
  0x61   :  { %v515_v47 = vmul.f32 %v509_v1, %v501_v36  ;;  %v517_v48 = vmul.f32 2.0, %v516_v45  ;;  %v623_v36 = vld [vmem:[%s800_s0 + $0x50] sm:$0xff] }
  0x62   :  { %v519_v49 = vmul.f32 %v514_v46, %v506_v41 }
  0x63   :  { %v518_v44 = vadd.f32 %v517_v48, %v515_v47 }
  0x65   :  { %v520_v50 = vadd.f32 %v519_v49, %v518_v44 }
  0x67   :  { %v525_v51 = vadd.f32 %v524_v7, %v520_v50 }
  0x69   :  { %v526_v52 = vmax.f32 %v525_v51, 0.0 }
  0x6b   :  { %649 = vrsqrt.f32 %v526_v52  ;;  %vm529_vm0 = vcmp.eq.f32.partialorder %v526_v52, inf  ;;  %v532_v4 = vand.u32 2147483648, %v526_v52  ;;  %vm531_vm1 = vcmp.eq.f32.partialorder %v526_v52, 0.0 }
  0x6c   :  { %651 = vrsqrt.f32 %v648_v54 }
  0x75   :  { %v650_v62 = vpop.eup %649 }
  0x76   :  { %v528_v8 = vmul.f32 %v650_v62, %v526_v52  ;;  %v652_v16 = vpop.eup %651 }
  0x77   :  { %v547_v21 = vmul.f32 %v652_v16, %v648_v54 }
  0x78   :  { %v530_v14 = vsel %vm529_vm0, %v526_v52, %v528_v8 }
  0x79   :  { %v533_v0 = vsel %vm531_vm1, %v532_v4, %v530_v14  ;;  %v549_v11 = vsel %vm548_vm2, %v648_v54, %v547_v21 }
  0x7a   :  { %v534_v63 = vmul.f32 2.0, %v533_v0  ;;  %v552_v12 = vsel %vm550_vm3, %v551_v10, %v549_v11 }
  0x7b   :  { %v553_v3 = vmin.f32 %v552_v12, 1000000.0 }
  0x7c   :  { %v535_v17 = vsub.f32 %v523_v9, %v534_v63 }
  0x7d   :  { %v554_v25 = vmul.f32 0.5, %v553_v3 }
  0x7e   :  { %v536_v20 = vadd.f32 %v535_v17, %v44_v15 }
  0x80   :  { %v537_v18 = vmax.f32 %v536_v20, 0.0 }
  0x82   :  { %653 = vrsqrt.f32 %v537_v18  ;;  %vm540_vm4 = vcmp.eq.f32.partialorder %v537_v18, inf  ;;  %v543_v23 = vand.u32 2147483648, %v537_v18  ;;  %vm542_vm5 = vcmp.eq.f32.partialorder %v537_v18, 0.0 }
  0x8c   :  { %v654_v22 = vpop.eup %653 }
  0x8d   :  { %v539_v24 = vmul.f32 %v654_v22, %v537_v18 }
  0x8f   :  { %v541_v26 = vsel %vm540_vm4, %v537_v18, %v539_v24 }
  0x90   :  { %v544_v27 = vsel %vm542_vm5, %v543_v23, %v541_v26 }
  0x91   :  { %v555_v28 = vmul.f32 %v554_v25, %v544_v27 }
  0x93   :  { %v556_v29 = vadd.f32 1.0, %v555_v28  ;;  %v559_v30 = vmul.f32 -0.5, %v555_v28  ;;  %v562_v32 = vand.u32 2147483647, %v555_v28 }
  0x95   :  { %655 = vlog2.f32 %v556_v29  ;;  %v560_v31 = vadd.f32 1.0, %v559_v30  ;;  %vm563_vm6 = vcmp.lt.f32.partialorder %v562_v32, 0.0004427343 }
  0x97   :  { %v561_v13 = vmul.f32 %v560_v31, %v555_v28 }
  0x9f   :  { %v656_v19 = vpop.eup %655 }
  0xa0   :  { %v558_v33 = vmul.f32 0.6931472, %v656_v19 }
  0xa2   :  { %v564_v2 = vsel %vm563_vm6, %v561_v13, %v558_v33 }
  0xa3   :  { %v565_v34 = vadd.f32 1.0, %v564_v2 }
  0xa5   :  { %657 = vrcp.f32 %v565_v34 }
  0xaf   :  { %v658_v35 = vpop.eup %657 }
  0xb0   :  { %v568_v37 = vsub.f32 1.0, %v658_v35 }
  0xb2   :  { %v572_v38 = vmul.f32 %v623_v36, %v568_v37 }
  0xb4   :  { %577 = vst [vmem:[%s801_s1] sm:$0xff] %v572_v38 }

</bundles_post_ra>
